<compile_context>
chip_gen: v7x
topology: tpu7x:2x2x1
jax: 0.10.0
libtpu: 0.0.40
codegen_flags: <defaults>
</compile_context>

<pallas_src>
import functools
import math

import jax
import jax.numpy as jnp
from jax import lax
from jax.experimental import pallas as pl
from jax.experimental.pallas import tpu as pltpu


def _cmal_kernel(y_ref, m_ref, b_ref, t_ref, p_ref, out_ref,
                 *, n_valid, n_comp, chunk_rows):
    """One grid step = one [tile_rows, LANE] slab of the flat [rows, LANE] view.

    Lane layout: the C mixture components of one position sit on C consecutive
    lanes (native [B, S, C] memory order, no transpose).  Per chunk the kernel
      1. evaluates the per-component likelihood term in linear space,
      2. sums each group of C lanes with lane shifts (the group sum lands on
         the group's leading lane),
      3. takes the log on leading lanes, masks everything else (including rows
         past the end of the data) and accumulates,
    and finally writes one partial sum per grid step.
    """
    f32 = jnp.float32
    tile_rows, lane_w = m_ref.shape
    cr = chunk_rows
    row0 = pl.program_id(0) * tile_rows

    # Hoisted constants reused by every chunk.
    lane_iota = lax.broadcasted_iota(jnp.int32, (cr, lane_w), 1)
    row_iota = lax.broadcasted_iota(jnp.int32, (cr, lane_w), 0)
    is_group_lead = (lane_iota % n_comp) == 0

    def chunk(ci, acc):
        r = pl.multiple_of(ci * cr, cr)
        y = y_ref[pl.ds(r, cr), :].astype(f32)
        m = m_ref[pl.ds(r, cr), :].astype(f32)
        b = b_ref[pl.ds(r, cr), :].astype(f32)
        t = t_ref[pl.ds(r, cr), :].astype(f32)
        p = p_ref[pl.ds(r, cr), :].astype(f32)

        # 1/b: EUP approximate reciprocal + two Newton steps (error << 1e-7).
        inv_b = pl.reciprocal(b, approx=True)
        inv_b = inv_b * (2.0 - b * inv_b)
        inv_b = inv_b * (2.0 - b * inv_b)

        err = y - m
        # max(t*e, (t-1)*e) == t*e + max(-e, 0)  (>= 0, so exp below can't overflow)
        pinball = (t * err + jnp.maximum(-err, 0.0)) * inv_b
        # linear-space weight == exp(log(p+1e-8) + log t + log(1-t) - log b)
        w = (p + 1e-8) * t * (1.0 - t) * inv_b
        term = w * jnp.exp(-pinball)

        # Sum each group of n_comp consecutive lanes; after the shifts the
        # leading lane of each group holds the full group sum.  jnp.roll with a
        # static shift lowers to a lane slice + concat; wrap-around only
        # contaminates lanes we never read.
        s = term
        if n_comp & (n_comp - 1) == 0:
            shift = 1
            while shift < n_comp:
                s = s + jnp.roll(s, -shift, axis=1)
                shift *= 2
        else:
            for k in range(1, n_comp):
                s = s + jnp.roll(term, -k, axis=1)

        lse = jnp.log(s)  # meaningful on group-lead lanes only

        flat_idx = (row0 + r + row_iota) * lane_w + lane_iota
        mask = is_group_lead & (flat_idx < n_valid)
        return acc + jnp.where(mask, lse, 0.0)

    acc = lax.fori_loop(0, tile_rows // cr, chunk,
                        jnp.zeros((cr, lane_w), f32))

    # Reduce to a single partial sum and place it at [0, 0] of an (8, 128)
    # output cell (keeps the out BlockSpec (8,128)-aligned; rest stays zero).
    partial = jnp.sum(jnp.sum(acc, axis=1, keepdims=True), axis=0, keepdims=True)
    sub_i = lax.broadcasted_iota(jnp.int32, (1, 8, 128), 1)
    lane_i = lax.broadcasted_iota(jnp.int32, (1, 8, 128), 2)
    out_ref[...] = jnp.where((sub_i == 0) & (lane_i == 0),
                             partial.reshape(1, 1, 1), 0.0)


def _round_up(x, m):
    return -(-x // m) * m


def _pick_lane_width(n_elems, n_comp, max_lane):
    """Widest lane row that is a multiple of lcm(128, C); prefer an exact divisor
    of the data so no padding copy is needed."""
    base = (128 * n_comp) // math.gcd(128, n_comp)
    k_max = max(1, max_lane // base)
    for k in range(k_max, 0, -1):
        if n_elems % (base * k) == 0:
            return base * k
    return base * k_max


def cmal_loss(yPred, yTrue, *, max_lane=512, target_rows=512, chunk_rows=8,
              vmem_limit_bytes=32 * 1024 * 1024):
    m, b, t, p = yPred
    B, S, C = m.shape
    P = B * S
    n_valid = P * C

    lane_w = _pick_lane_width(n_valid, C, max_lane)
    pos_per_row = lane_w // C
    P_pad = _round_up(P, pos_per_row)
    rows = (P_pad * C) // lane_w

    # The only extra HBM traffic vs. the theoretical optimum: broadcast yTrue
    # across the mixture axis so it aligns lane-for-lane with the interleaved
    # component layout.  Still ~2x less traffic than transposing m/b/t/p.
    y_b = jnp.broadcast_to(yTrue[..., None], (B, S, C))

    def prep(x, pad_value):
        x2d = x.reshape(P, C)
        if P_pad != P:  # benign pads: finite everywhere, masked out in-kernel
            x2d = jnp.pad(x2d, ((0, P_pad - P), (0, 0)),
                          constant_values=pad_value)
        return x2d.reshape(rows, lane_w)

    yf = prep(y_b, 0.0)
    mf = prep(m, 0.0)
    bf = prep(b, 1.0)
    tf = prep(t, 0.5)
    pf = prep(p, 0.0)

    cr = max(1, min(chunk_rows, target_rows, rows))
    tr = min(target_rows, rows)
    tr = max(cr, (tr // cr) * cr)
    grid = pl.cdiv(rows, tr)

    in_spec = pl.BlockSpec((tr, lane_w), lambda i: (i, 0))
    out_spec = pl.BlockSpec((1, 8, 128), lambda i: (i, 0, 0))

    kernel = functools.partial(_cmal_kernel, n_valid=n_valid, n_comp=C,
                               chunk_rows=cr)

    partials = pl.pallas_call(
        kernel,
        out_shape=jax.ShapeDtypeStruct((grid, 8, 128), jnp.float32),
        grid=(grid,),
        in_specs=[in_spec] * 5,
        out_specs=out_spec,
        compiler_params=pltpu.CompilerParams(
            dimension_semantics=("parallel",),
            vmem_limit_bytes=vmem_limit_bytes),
    )(yf, mf, bf, tf, pf)

    # -mean over batch of (sum over seq of logsumexp)  ==  -sum(all) / B
    return -jnp.sum(partials) / B


def cmal_loss_ref(yPred, yTrue):
    m, b, t, p = yPred
    error = yTrue[..., None] - m
    log_like = (jnp.log(t) + jnp.log(1.0 - t) - jnp.log(b)
                - jnp.maximum(t * error, (t - 1.0) * error) / b)
    log_w = jnp.log(p + 1e-8)
    lse = jax.scipy.special.logsumexp(log_w + log_like, axis=2)
    return -jnp.mean(jnp.sum(lse, axis=1))


def _make_inputs(key, B, S, C, dtype=jnp.float32):
    km, kb, kt, kp, ky = jax.random.split(key, 5)
    m = jax.random.normal(km, (B, S, C), dtype=jnp.float32)
    b = jax.nn.softplus(jax.random.normal(kb, (B, S, C), dtype=jnp.float32)) + 0.1
    t = jax.nn.sigmoid(jax.random.normal(kt, (B, S, C), dtype=jnp.float32)) * 0.98 + 0.01
    p = jax.nn.softmax(jax.random.normal(kp, (B, S, C), dtype=jnp.float32), axis=-1)
    y = jax.random.normal(ky, (B, S), dtype=jnp.float32)
    cast = lambda a: a.astype(dtype)
    return (cast(m), cast(b), cast(t), cast(p)), cast(y)


if __name__ == "__main__":
    key = jax.random.PRNGKey(0)

    cases = [
        (2, 96, 4, {}),                        # single tile, exact divide
        (2, 640, 4, dict(target_rows=8)),      # multi-step grid + edge masking
        (2, 25, 4, {}),                        # odd size -> position-padding path
    ]
    for B, S, C, kwargs in cases:
        key, sub = jax.random.split(key)
        yPred, yTrue = _make_inputs(sub, B, S, C)
        out = jax.block_until_ready(cmal_loss(yPred, yTrue, **kwargs))
        ref = cmal_loss_ref(yPred, yTrue)
        assert jnp.allclose(out, ref, rtol=1e-5, atol=1e-5), ((B, S, C), out, ref)

    # bf16 inputs are accepted (kernel upcasts to f32 after load); compare
    # against the reference evaluated on the same bf16-rounded values.
    key, sub = jax.random.split(key)
    yPred16, yTrue16 = _make_inputs(sub, 2, 96, 4, dtype=jnp.bfloat16)
    yPred32 = tuple(a.astype(jnp.float32) for a in yPred16)
    out = jax.block_until_ready(cmal_loss(yPred16, yTrue16))
    ref = cmal_loss_ref(yPred32, yTrue16.astype(jnp.float32))
    assert jnp.allclose(out, ref, rtol=1e-5, atol=1e-5), (out, ref)

    print("KERNEL_OK")
</pallas_src>

<mosaic_0001>
module attributes {stable_mosaic.version = 11 : i64} {
  func.func @_cmal_kernel(%arg0: i32, %arg1: memref<2x384xf32, #tpu.memory_space<vmem>>, %arg2: memref<2x384xf32, #tpu.memory_space<vmem>>, %arg3: memref<2x384xf32, #tpu.memory_space<vmem>>, %arg4: memref<2x384xf32, #tpu.memory_space<vmem>>, %arg5: memref<2x384xf32, #tpu.memory_space<vmem>>, %arg6: memref<1x8x128xf32, #tpu.memory_space<vmem>>) attributes {dimension_semantics = [#tpu.dimension_semantics<parallel>], iteration_bounds = array<i64: 1>, scalar_prefetch = 0 : i64, scratch_operands = 0 : i64, tpu.core_type = #tpu.core_type<tc>, window_params = [{transform_indices = @transform_0, window_bounds = array<i64: 2, 384>}, {transform_indices = @transform_1, window_bounds = array<i64: 2, 384>}, {transform_indices = @transform_2, window_bounds = array<i64: 2, 384>}, {transform_indices = @transform_3, window_bounds = array<i64: 2, 384>}, {transform_indices = @transform_4, window_bounds = array<i64: 2, 384>}, {transform_indices = @transform_5, window_bounds = array<i64: 1, 8, 128>}]} {
    %c2_i32 = arith.constant 2 : i32
    %0 = arith.muli %arg0, %c2_i32 : i32
    %1 = tpu.iota {dimensions = array<i32: 1>} : vector<2x384xi32>
    %2 = tpu.iota {dimensions = array<i32: 0>} : vector<2x384xi32>
    %c4_i32 = arith.constant 4 : i32
    %c0_i32 = arith.constant 0 : i32
    %3 = arith.cmpi eq, %c4_i32, %c0_i32 : i32
    %c1_i32 = arith.constant 1 : i32
    %4 = arith.select %3, %c1_i32, %c4_i32 : i32
    %5 = vector.broadcast %4 : i32 to vector<2x384xi32>
    %6 = arith.remsi %1, %5 : vector<2x384xi32>
    %c0_i32_0 = arith.constant 0 : i32
    %7 = vector.broadcast %c0_i32_0 : i32 to vector<2x384xi32>
    %8 = arith.cmpi ne, %6, %7 : vector<2x384xi32>
    %c0_i32_1 = arith.constant 0 : i32
    %9 = vector.broadcast %c0_i32_1 : i32 to vector<2x384xi32>
    %10 = arith.cmpi slt, %6, %9 : vector<2x384xi32>
    %c0_i32_2 = arith.constant 0 : i32
    %11 = arith.cmpi slt, %4, %c0_i32_2 : i32
    %12 = vector.broadcast %11 : i1 to vector<2x384xi1>
    %13 = vector.broadcast %12 : vector<2x384xi1> to vector<2x384xi1>
    %14 = arith.xori %10, %13 : vector<2x384xi1>
    %15 = arith.andi %14, %8 : vector<2x384xi1>
    %16 = vector.broadcast %4 : i32 to vector<2x384xi32>
    %17 = arith.addi %6, %16 : vector<2x384xi32>
    %18 = arith.select %15, %17, %6 : vector<2x384xi1>, vector<2x384xi32>
    %c0_i32_3 = arith.constant 0 : i32
    %19 = vector.broadcast %c0_i32_3 : i32 to vector<2x384xi32>
    %20 = arith.cmpi eq, %18, %19 : vector<2x384xi32>
    %cst = arith.constant 0.000000e+00 : f32
    %21 = vector.broadcast %cst : f32 to vector<2x384xf32>
    %c0_i32_4 = arith.constant 0 : i32
    %c2_i32_5 = arith.constant 2 : i32
    %22 = arith.muli %c0_i32_4, %c2_i32_5 : i32
    %23 = tpu.assume_multiple %22, 2 : i32
    %24 = arith.index_cast %23 : i32 to index
    %c0 = arith.constant 0 : index
    %25 = vector.load %arg1[%24, %c0] : memref<2x384xf32, #tpu.memory_space<vmem>>, vector<2x384xf32>
    %26 = arith.index_cast %23 : i32 to index
    %c0_6 = arith.constant 0 : index
    %27 = vector.load %arg2[%26, %c0_6] : memref<2x384xf32, #tpu.memory_space<vmem>>, vector<2x384xf32>
    %28 = arith.index_cast %23 : i32 to index
    %c0_7 = arith.constant 0 : index
    %29 = vector.load %arg3[%28, %c0_7] : memref<2x384xf32, #tpu.memory_space<vmem>>, vector<2x384xf32>
    %30 = arith.index_cast %23 : i32 to index
    %c0_8 = arith.constant 0 : index
    %31 = vector.load %arg4[%30, %c0_8] : memref<2x384xf32, #tpu.memory_space<vmem>>, vector<2x384xf32>
    %32 = arith.index_cast %23 : i32 to index
    %c0_9 = arith.constant 0 : index
    %33 = vector.load %arg5[%32, %c0_9] : memref<2x384xf32, #tpu.memory_space<vmem>>, vector<2x384xf32>
    %34 = tpu.reciprocal %29 {approx = true} : vector<2x384xf32> -> vector<2x384xf32>
    %35 = arith.mulf %29, %34 : vector<2x384xf32>
    %cst_10 = arith.constant 2.000000e+00 : f32
    %36 = vector.broadcast %cst_10 : f32 to vector<2x384xf32>
    %37 = arith.subf %36, %35 : vector<2x384xf32>
    %38 = arith.mulf %34, %37 : vector<2x384xf32>
    %39 = arith.mulf %29, %38 : vector<2x384xf32>
    %cst_11 = arith.constant 2.000000e+00 : f32
    %40 = vector.broadcast %cst_11 : f32 to vector<2x384xf32>
    %41 = arith.subf %40, %39 : vector<2x384xf32>
    %42 = arith.mulf %38, %41 : vector<2x384xf32>
    %43 = arith.subf %25, %27 : vector<2x384xf32>
    %44 = arith.mulf %31, %43 : vector<2x384xf32>
    %cst_12 = arith.constant 0.000000e+00 : f32
    %45 = vector.broadcast %cst_12 : f32 to vector<2x384xf32>
    %46 = arith.subf %45, %43 : vector<2x384xf32>
    %cst_13 = arith.constant 0.000000e+00 : f32
    %47 = vector.broadcast %cst_13 : f32 to vector<2x384xf32>
    %48 = arith.maximumf %46, %47 : vector<2x384xf32>
    %49 = arith.addf %44, %48 : vector<2x384xf32>
    %50 = arith.mulf %49, %42 : vector<2x384xf32>
    %cst_14 = arith.constant 9.99999993E-9 : f32
    %51 = vector.broadcast %cst_14 : f32 to vector<2x384xf32>
    %52 = arith.addf %33, %51 : vector<2x384xf32>
    %53 = arith.mulf %52, %31 : vector<2x384xf32>
    %cst_15 = arith.constant 1.000000e+00 : f32
    %54 = vector.broadcast %cst_15 : f32 to vector<2x384xf32>
    %55 = arith.subf %54, %31 : vector<2x384xf32>
    %56 = arith.mulf %53, %55 : vector<2x384xf32>
    %57 = arith.mulf %56, %42 : vector<2x384xf32>
    %cst_16 = arith.constant 0.000000e+00 : f32
    %58 = vector.broadcast %cst_16 : f32 to vector<2x384xf32>
    %59 = arith.subf %58, %50 : vector<2x384xf32>
    %60 = math.exp %59 : vector<2x384xf32>
    %61 = arith.mulf %57, %60 : vector<2x384xf32>
    %62 = vector.extract_strided_slice %61 {offsets = [0, 1], sizes = [2, 383], strides = [1, 1]} : vector<2x384xf32> to vector<2x383xf32>
    %63 = vector.extract_strided_slice %61 {offsets = [0, 0], sizes = [2, 1], strides = [1, 1]} : vector<2x384xf32> to vector<2x1xf32>
    %64 = tpu.concatenate %62, %63 in 1 : vector<2x383xf32>, vector<2x1xf32> -> vector<2x384xf32>
    %65 = arith.addf %61, %64 : vector<2x384xf32>
    %66 = vector.extract_strided_slice %65 {offsets = [0, 2], sizes = [2, 382], strides = [1, 1]} : vector<2x384xf32> to vector<2x382xf32>
    %67 = vector.extract_strided_slice %65 {offsets = [0, 0], sizes = [2, 2], strides = [1, 1]} : vector<2x384xf32> to vector<2x2xf32>
    %68 = tpu.concatenate %66, %67 in 1 : vector<2x382xf32>, vector<2x2xf32> -> vector<2x384xf32>
    %69 = arith.addf %65, %68 : vector<2x384xf32>
    %70 = math.log %69 : vector<2x384xf32>
    %71 = arith.addi %0, %23 : i32
    %72 = vector.broadcast %71 : i32 to vector<2x384xi32>
    %73 = arith.addi %72, %2 : vector<2x384xi32>
    %c384_i32 = arith.constant 384 : i32
    %74 = vector.broadcast %c384_i32 : i32 to vector<2x384xi32>
    %75 = arith.muli %73, %74 : vector<2x384xi32>
    %76 = arith.addi %75, %1 : vector<2x384xi32>
    %c768_i32 = arith.constant 768 : i32
    %77 = vector.broadcast %c768_i32 : i32 to vector<2x384xi32>
    %78 = arith.cmpi slt, %76, %77 : vector<2x384xi32>
    %79 = arith.andi %20, %78 : vector<2x384xi1>
    %cst_17 = arith.constant 0.000000e+00 : f32
    %80 = vector.broadcast %cst_17 : f32 to vector<2x384xf32>
    %81 = arith.select %79, %70, %80 : vector<2x384xi1>, vector<2x384xf32>
    %82 = arith.addf %21, %81 : vector<2x384xf32>
    %c1_i32_18 = arith.constant 1 : i32
    %cst_19 = arith.constant dense<0.000000e+00> : vector<2xf32>
    %83 = vector.multi_reduction <add>, %82, %cst_19 [1] : vector<2x384xf32> to vector<2xf32>
    %84 = vector.shape_cast %83 : vector<2xf32> to vector<2x1xf32>
    %cst_20 = arith.constant dense<0.000000e+00> : vector<1xf32>
    %85 = vector.multi_reduction <add>, %84, %cst_20 [0] : vector<2x1xf32> to vector<1xf32>
    %86 = vector.shape_cast %85 : vector<1xf32> to vector<1x1xf32>
    %87 = tpu.iota {dimensions = array<i32: 1>} : vector<1x8x128xi32>
    %88 = tpu.iota {dimensions = array<i32: 2>} : vector<1x8x128xi32>
    %c0_i32_21 = arith.constant 0 : i32
    %89 = vector.broadcast %c0_i32_21 : i32 to vector<1x8x128xi32>
    %90 = arith.cmpi eq, %87, %89 : vector<1x8x128xi32>
    %c0_i32_22 = arith.constant 0 : i32
    %91 = vector.broadcast %c0_i32_22 : i32 to vector<1x8x128xi32>
    %92 = arith.cmpi eq, %88, %91 : vector<1x8x128xi32>
    %93 = arith.andi %90, %92 : vector<1x8x128xi1>
    %94 = vector.shape_cast %86 : vector<1x1xf32> to vector<1x1x1xf32>
    %cst_23 = arith.constant 0.000000e+00 : f32
    %95 = vector.shape_cast %94 : vector<1x1x1xf32> to vector<1x1x1xf32>
    %96 = vector.broadcast %95 : vector<1x1x1xf32> to vector<1x8x128xf32>
    %97 = vector.broadcast %cst_23 : f32 to vector<1x8x128xf32>
    %98 = arith.select %93, %96, %97 : vector<1x8x128xi1>, vector<1x8x128xf32>
    %c0_24 = arith.constant 0 : index
    %c0_25 = arith.constant 0 : index
    %c0_26 = arith.constant 0 : index
    %99 = vector.load %arg6[%c0_24, %c0_25, %c0_26] : memref<1x8x128xf32, #tpu.memory_space<vmem>>, vector<1x8x128xf32>
    tpu.vector_store %arg6[%c0_24, %c0_25, %c0_26], %98 {strides = array<i32>} : memref<1x8x128xf32, #tpu.memory_space<vmem>>, vector<1x8x128xf32>,
    return
  }
  func.func @transform_0(%arg0: i32) -> (i32, i32) {
    %c0_i32 = arith.constant 0 : i32
    %c0_i32_0 = arith.constant 0 : i32
    return %arg0, %c0_i32 : i32, i32
  }
  func.func @transform_1(%arg0: i32) -> (i32, i32) {
    %c0_i32 = arith.constant 0 : i32
    %c0_i32_0 = arith.constant 0 : i32
    return %arg0, %c0_i32 : i32, i32
  }
  func.func @transform_2(%arg0: i32) -> (i32, i32) {
    %c0_i32 = arith.constant 0 : i32
    %c0_i32_0 = arith.constant 0 : i32
    return %arg0, %c0_i32 : i32, i32
  }
  func.func @transform_3(%arg0: i32) -> (i32, i32) {
    %c0_i32 = arith.constant 0 : i32
    %c0_i32_0 = arith.constant 0 : i32
    return %arg0, %c0_i32 : i32, i32
  }
  func.func @transform_4(%arg0: i32) -> (i32, i32) {
    %c0_i32 = arith.constant 0 : i32
    %c0_i32_0 = arith.constant 0 : i32
    return %arg0, %c0_i32 : i32, i32
  }
  func.func @transform_5(%arg0: i32) -> (i32, i32, i32) {
    %c0_i32 = arith.constant 0 : i32
    %c0_i32_0 = arith.constant 0 : i32
    %c0_i32_1 = arith.constant 0 : i32
    return %arg0, %c0_i32, %c0_i32_0 : i32, i32, i32
  }
}

</mosaic_0001>

<bundles_post_ra>
// kernel: tpu_custom_call.1
= control target key start
LH: loop header
LB: loop body
LE: loop exit
PB: predicated region body
PF: predicated region fallthrough
CT: control target
= control target key end

     0   :  { %10 = vsyncpa [#allocation3], 0  ;;  %s528_s0 = inlined_call_operand.hbm [shape: f32[2,384], index: 0, kind: input, shape index: {}]   ;;  %s529_s1 = inlined_call_operand.hbm [shape: f32[2,384], index: 1, kind: input, shape index: {}]   ;;  %s530_s2 = inlined_call_operand.vmem [shape: f32[2,384], index: 2, kind: input, shape index: {}]   ;;  %s531_s3 = inlined_call_operand.hbm [shape: f32[2,384], index: 3, kind: input, shape index: {}]   ;;  %s532_s4 = inlined_call_operand.vmem [shape: f32[2,384], index: 4, kind: input, shape index: {}]   ;;  %s533_s5 = inlined_call_operand.hbm [shape: f32[1,8,128], index: 5, kind: output, shape index: {}]  }
   0x1   :  { %11 = vsyncpa [#allocation6], 0 }
   0x2   :  { %12 = vsyncpa [#allocation4], 0  ;;  %s420_s18 = smov [#allocation5]   ;;  %s421_s20 = smov [#allocation2]  }
   0x3   :  { %s29_s19 = sshll.u32 %s420_s18, 4  ;;  %s19_s21 = sshll.u32 %s421_s20, 4  ;;  %s30_s19 = int_to_ptr.vmem [resolvable:$true] %s29_s19  ;;  %s20_s21 = int_to_ptr.vmem [resolvable:$true] %s19_s21 }
   0x4   :  { %s326_s24 = scalar_lea.hbm %s529_s1, 96 }
   0x5   :  { %p327_p0 = scmp.ne.s32.totalorder %s529_s1, %s326_s24  ;;  %p330_p1 = scmp.lt.u32.totalorder %s326_s24, %s529_s1 }
   0x7   :  { %p332_p2 = pnand %p330_p1, %p327_p0 }
   0x9   :  { %335 = shalt.err (!%p332_p2)
}
   0xa   :  { %s336_s29 = scalar_lea.vmem %s30_s19, 96  ;;  %p341_p4 = scmp.lt.s32.totalorder %s30_s19, %s30_s19 }
   0xb   :  { %p337_p3 = scmp.ne.s32.totalorder %s30_s19, %s336_s29  ;;  %p342_p5 = scmp.lt.s32.totalorder %s336_s29, %s336_s29 }
   0xd   :  { %p343_p6 = por %p342_p5, %p341_p4 }
   0xf   :  { %p344_p7 = pnand %p343_p6, %p337_p3 }
  0x11   :  { %347 = shalt.err (!%p344_p7)
}
  0x12   :  { %32 = dma.hbm_to_vmem [thread:$0]  %s529_s1, 96, %s30_s19, [#allocation6]  }
  0x13   :  { %s348_s9 = scalar_lea.hbm %s528_s0, 96 }
  0x14   :  { %p349_p8 = scmp.ne.s32.totalorder %s528_s0, %s348_s9  ;;  %p352_p9 = scmp.lt.u32.totalorder %s348_s9, %s528_s0 }
  0x16   :  { %p354_p10 = pnand %p352_p9, %p349_p8 }
  0x18   :  { %357 = shalt.err (!%p354_p10)
}
  0x19   :  { %s358_s14 = scalar_lea.vmem %s20_s21, 96  ;;  %p363_p12 = scmp.lt.s32.totalorder %s20_s21, %s20_s21 }
  0x1a   :  { %p359_p11 = scmp.ne.s32.totalorder %s20_s21, %s358_s14  ;;  %p364_p13 = scmp.lt.s32.totalorder %s358_s14, %s358_s14 }
  0x1c   :  { %p365_p0 = por %p364_p13, %p363_p12 }
  0x1e   :  { %p366_p1 = pnand %p365_p0, %p359_p11 }
  0x20   :  { %369 = shalt.err (!%p366_p1)
}
  0x21   :  { %22 = dma.hbm_to_vmem [thread:$0]  %s528_s0, 96, %s20_s21, [#allocation3]  }
  0x22   :  { %s422_s16 = smov [#allocation7]   ;;  %s370_s20 = scalar_lea.hbm %s531_s3, 96 }
  0x23   :  { %s41_s17 = sshll.u32 %s422_s16, 4  ;;  %p371_p2 = scmp.ne.s32.totalorder %s531_s3, %s370_s20  ;;  %s42_s17 = int_to_ptr.vmem [resolvable:$true] %s41_s17 }
  0x24   :  { %p374_p3 = scmp.lt.u32.totalorder %s370_s20, %s531_s3 }
  0x26   :  { %p376_p4 = pnand %p374_p3, %p371_p2 }
  0x28   :  { %379 = shalt.err (!%p376_p4)
}
  0x29   :  { %s380_s26 = scalar_lea.vmem %s42_s17, 96  ;;  %p385_p6 = scmp.lt.s32.totalorder %s42_s17, %s42_s17 }
  0x2a   :  { %p381_p5 = scmp.ne.s32.totalorder %s42_s17, %s380_s26  ;;  %p386_p7 = scmp.lt.s32.totalorder %s380_s26, %s380_s26 }
  0x2c   :  { %p387_p8 = por %p386_p7, %p385_p6 }
  0x2e   :  { %p388_p9 = pnand %p387_p8, %p381_p5 }
  0x30   :  { %391 = shalt.err (!%p388_p9)
}
  0x31   :  { %44 = dma.hbm_to_vmem [thread:$0]  %s531_s3, 96, %s42_s17, [#allocation6]  }
  0x32   :  { %414 = dma.done.wait [#allocation3], 96  }
  0x33   :  { %415 = vsyncadd [#allocation3], 4294967200 }
  0x34   :  { %416 = dma.done.wait [#allocation6], 192  }
  0x35   :  { %417 = vsyncadd [#allocation6], 4294967104  ;;  %v111_v0 = vld [vmem:[%s530_s2] sm:$0x3f]  ;;  %v108_v2 = vld [vmem:[#allocation5] sm:$0x3f]  ;;  %v57_v23 = vlaneseq }
  0x36   :  { %320 = vrcp.f32 %v111_v0  ;;  %v105_v1 = vld [vmem:[#allocation2] sm:$0x3f]  ;;  %v114_v7 = vld [vmem:[#allocation7] sm:$0x3f]  ;;  %v423_v24 = vmov 1983009808  }
  0x37   :  { %v125_v3 = vsub.f32 %v105_v1, %v108_v2  ;;  %v117_v15 = vld [vmem:[%s532_s4] sm:$0x3f]  ;;  %v133_v22 = vsub.f32 1.0, %v114_v7  ;;  %v143_v25 = vunpack.c.l.s4 %v423_v24  ;;  %v499_v27 = vshrl.u32 %v57_v23, 7  ;;  %s424_s2 = smov 127   ;;  %s425_s4 = smov 126  }
  0x38   :  { %v131_v18 = vadd.f32 1e-08, %v117_v15  ;;  %vm163_vm0 = vcmask 1039360   ;;  %vm211_vm1 = vcmask 1031168   ;;  %v58_v63 = vand.u32 127, %v57_v23  ;;  %s426_s30 = smov [#allocation8]  }
  0x39   :  { %v127_v6 = vsub.f32 0.0, %v125_v3  ;;  %v126_v10 = vmul.f32 %v125_v3, %v114_v7  ;;  %v144_v28 = vunpack.c.0.s8 %v143_v25  ;;  %vm277_vm11 = vcmask 1041408   ;;  %s303_s6 = sshll.u32 %s426_s30, 4  ;;  %s304_s6 = int_to_ptr.vmem [resolvable:$true] %s303_s6 }
  0x3a   :  { %v132_v21 = vmul.f32 %v131_v18, %v114_v7  ;;  %v59_v1 = vadd.s32 128, %v58_v63  ;;  %v60_v2 = vadd.s32 256, %v58_v63  ;;  %v67_v3 = vand.u32 3, %v58_v63  ;;  %s392_s7 = scalar_lea.vmem %s304_s6, 128  ;;  %p397_p11 = scmp.lt.s32.totalorder %s304_s6, %s304_s6 }
  0x3b   :  { %v128_v11 = vmax.f32 %v127_v6, 0.0  ;;  %v502_v30 = vsub.s32 %v144_v28, %v499_v27  ;;  %vm292_vm12 = vcmp.eq.s32.totalorder %v499_v27, 0  ;;  %vm293_vm13 = vcmp.eq.s32.totalorder %v58_v63, 0  ;;  %p393_p10 = scmp.ne.s32.totalorder %s304_s6, %s392_s7  ;;  %p398_p12 = scmp.lt.s32.totalorder %s392_s7, %s392_s7 }
  0x3c   :  { %v134_v26 = vmul.f32 %v133_v22, %v132_v21  ;;  %v81_v7 = vand.u32 3, %v60_v2  ;;  %vm99_vm2 = vcmp.eq.s32.totalorder %v67_v3, 0  ;;  %vm294_vm14 = vmand %vm292_vm12, %vm293_vm13 }
  0x3d   :  { %v129_v14 = vadd.f32 %v128_v11, %v126_v10  ;;  %p399_p13 = por %p398_p12, %p397_p11 }
  0x3e   :  { %vm101_vm6 = vcmp.eq.s32.totalorder %v81_v7, 0 }
  0x3f   :  { %p400_p0 = pnand %p399_p13, %p393_p10 }
  0x40   :  { %v321_v4 = vpop.eup %320 }
  0x41   :  { %v119_v5 = vmul.f32 %v321_v4, %v111_v0 }
  0x43   :  { %v120_v8 = vsub.f32 2.0, %v119_v5  ;;  %v74_v5 = vand.u32 3, %v59_v1 }
  0x45   :  { %v121_v9 = vmul.f32 %v321_v4, %v120_v8  ;;  %vm100_vm4 = vcmp.eq.s32.totalorder %v74_v5, 0 }
  0x47   :  { %v122_v12 = vmul.f32 %v121_v9, %v111_v0  ;;  %v241_v0 = vmul.u32 384, %v499_v27 }
  0x49   :  { %v123_v13 = vsub.f32 2.0, %v122_v12  ;;  %v242_v4 = vadd.s32 %v241_v0, %v58_v63  ;;  %v243_v6 = vadd.s32 %v241_v0, %v59_v1  ;;  %v244_v8 = vadd.s32 %v241_v0, %v60_v2 }
  0x4b   :  { %v124_v16 = vmul.f32 %v123_v13, %v121_v9  ;;  %vm245_vm3 = vcmp.lt.s32.totalorder %v242_v4, 768  ;;  %vm246_vm5 = vcmp.lt.s32.totalorder %v243_v6, 768  ;;  %vm247_vm7 = vcmp.lt.s32.totalorder %v244_v8, 768 }
  0x4c   :  { %vm248_vm8 = vmand %vm99_vm2, %vm245_vm3 }
  0x4d   :  { %v130_v17 = vmul.f32 %v129_v14, %v124_v16  ;;  %v135_v29 = vmul.f32 %v134_v26, %v124_v16  ;;  %vm249_vm9 = vmand %vm100_vm4, %vm246_vm5 }
  0x4e   :  { %vm250_vm10 = vmand %vm101_vm6, %vm247_vm7 }
  0x4f   :  { %v136_v19 = vsub.f32 0.0, %v130_v17 }
  0x51   :  { %v137_v20 = vmul.f32 1.442695, %v136_v19 }
  0x53   :  { %322 = vpow2.f32 %v137_v20 }
  0x5d   :  { %v323_v31 = vpop.eup %322 }
  0x5e   :  { %v139_v32 = vmul.f32 %v323_v31, %v135_v29 }
  0x60   :  { %v148_v33 = vrot.slane %v139_v32, %v502_v30  ;;  %v141_v34 = vcombine.high %v139_v32, %v139_v32 }
  0x62   :  { %157 = vrot.lane.b32.xlu0 %v148_v33, %s424_s2  ;;  %v156_v35 = vcombine.high %v148_v33, %v148_v33  ;;  %v155_v36 = vrot.slane %v141_v34, %v502_v30 }
  0x64   :  { %161 = vrot.lane.b32.xlu1 %v155_v36, %s424_s2 }
  0x66   :  { %159 = vrot.lane.b32.xlu0 %v156_v35, %s424_s2 }
  0xd4   :  { %v158_v37 = vpop.permute.xlu0 %157 }
  0xd6   :  { %v162_v38 = vpop.permute.xlu1 %161 }
  0xd7   :  { %v168_v40 = vsel %vm163_vm0, %v162_v38, %v158_v37 }
  0xd8   :  { %v160_v39 = vpop.permute.xlu0 %159  ;;  %v184_v44 = vrot.slane %v168_v40, %v502_v30 }
  0xd9   :  { %v164_v41 = vsel %vm163_vm0, %v158_v37, %v160_v39  ;;  %v165_v42 = vsel %vm163_vm0, %v160_v39, %v162_v38 }
  0xda   :  { %v170_v43 = vcombine.low %v164_v41, %v165_v42 }
  0xdc   :  { %v177_v45 = vrot.slane %v170_v43, %v502_v30 }
  0xde   :  { %v185_v46 = vcombine.low %v177_v45, %v184_v44 }
  0xe0   :  { %v187_v47 = vadd.f32 %v185_v46, %v139_v32 }
  0xe2   :  { %v196_v48 = vrot.slane %v187_v47, %v502_v30  ;;  %v189_v49 = vcombine.high %v187_v47, %v187_v47 }
  0xe4   :  { %205 = vrot.lane.b32.xlu1 %v196_v48, %s425_s4  ;;  %v204_v50 = vcombine.high %v196_v48, %v196_v48  ;;  %v203_v51 = vrot.slane %v189_v49, %v502_v30 }
  0xe6   :  { %207 = vrot.lane.b32.xlu0 %v204_v50, %s425_s4 }
  0xe8   :  { %209 = vrot.lane.b32.xlu1 %v203_v51, %s425_s4 }
 0x156   :  { %v206_v52 = vpop.permute.xlu1 %205 }
 0x158   :  { %v208_v53 = vpop.permute.xlu0 %207 }
 0x159   :  { %v212_v55 = vsel %vm211_vm1, %v206_v52, %v208_v53 }
 0x15a   :  { %v210_v54 = vpop.permute.xlu1 %209 }
 0x15b   :  { %v213_v56 = vsel %vm211_vm1, %v208_v53, %v210_v54  ;;  %v216_v57 = vsel %vm211_vm1, %v210_v54, %v206_v52 }
 0x15c   :  { %v218_v58 = vcombine.low %v212_v55, %v213_v56  ;;  %v232_v60 = vrot.slane %v216_v57, %v502_v30 }
 0x15e   :  { %v225_v59 = vrot.slane %v218_v58, %v502_v30 }
 0x160   :  { %v233_v61 = vcombine.low %v225_v59, %v232_v60 }
 0x162   :  { %v235_v62 = vadd.f32 %v233_v61, %v187_v47 }
 0x164   :  { %324 = vlog2.f32 %v235_v62 }
 0x16e   :  { %v325_v9 = vpop.eup %324 }
 0x16f   :  { %v237_v10 = vmul.f32 0.6931472, %v325_v9 }
 0x171   :  { %v252_v11 = vcombine.high %v237_v10, %v237_v10  ;;  %v259_v12 = vrot.slane %v237_v10, %v502_v30 }
 0x173   :  { %v266_v13 = vrot.slane %v252_v11, %v502_v30  ;;  %v267_v14 = vcombine.high %v259_v12, %v259_v12  ;;  %v271_v15 = vsel %vm248_vm8, %v259_v12, 0.0 }
 0x174   :  { %v278_v18 = vsel %vm277_vm11, %v271_v15, 0.0 }
 0x175   :  { %v272_v16 = vsel %vm249_vm9, %v267_v14, 0.0  ;;  %v273_v17 = vsel %vm250_vm10, %v266_v13, 0.0 }
 0x176   :  { %v279_v19 = vsel %vm277_vm11, %v272_v16, 0.0  ;;  %v281_v21 = vsel %vm277_vm11, %v273_v17, 0.0 }
 0x177   :  { %v280_v20 = vadd.f32 %v279_v19, %v278_v18 }
 0x179   :  { %v282_v22 = vadd.f32 %v281_v21, %v280_v20 }
 0x17b   :  { %283 = vadd.xlane.f32.xlu0 %v282_v22 }
 0x208   :  { %v284_v23 = vpop.xlane.xlu0 %283 }
 0x209   :  { %v285_v24 = vsel %vm277_vm11, %v284_v23, 0.0 }
 0x20a   :  { %v286_v25 = vrot.slane %v285_v24, 4 }
 0x20c   :  { %v287_v26 = vadd.f32 %v286_v25, %v285_v24 }
 0x20e   :  { %v288_v28 = vrot.slane %v287_v26, 2 }
 0x210   :  { %v289_v29 = vadd.f32 %v288_v28, %v287_v26 }
 0x212   :  { %v290_v30 = vrot.slane %v289_v29, 1 }
 0x214   :  { %v291_v31 = vadd.f32 %v290_v30, %v289_v29 }
 0x216   :  { %v295_v32 = vsel %vm294_vm14, %v291_v31, 0.0 }
 0x217   :  { %296 = vst [vmem:[#allocation8] sm:$0xff] %v295_v32 }
 0x218   :  { %403 = shalt.err (!%p400_p0)
}
 0x219   :  { %s404_s10 = scalar_lea.hbm %s533_s5, 128 }
 0x21a   :  { %p405_p1 = scmp.ne.s32.totalorder %s533_s5, %s404_s10  ;;  %p408_p2 = scmp.lt.u32.totalorder %s404_s10, %s533_s5 }
 0x21c   :  { %p410_p3 = pnand %p408_p2, %p405_p1 }
 0x21e   :  { %413 = shalt.err (!%p410_p3)
}
 0x21f   :  { %306 = dma.vmem_to_hbm [thread:$0]  %s304_s6, 128, %s533_s5, [#allocation4]  }
 0x220   :  { %418 = dma.done.wait [#allocation4], 128  }
 0x221   :  { %419 = vsyncadd [#allocation4], 4294967168 }
 0x222   :  { %310 = vsyncpa [#allocation3], 1 }
 0x223   :  { %311 = vsyncpa [#allocation6], 1 }
 0x224   :  { %312 = vsyncpa [#allocation4], 1 }

</bundles_post_ra>
